<compile_context>
chip_gen: v5e
topology: v5e:2x2
jax: 0.10.0
libtpu: 0.0.40
codegen_flags: <defaults>
</compile_context>

<pallas_src>
import jax
import jax.numpy as jnp
from jax.experimental import pallas as pl
from jax.experimental.pallas import tpu as pltpu


# ----------------------------------------------------------------------------
# Single fused kernel: one grid point per batch block of Bt elements.
#   inp_ref  : (Bt*L, bert_dim) bf16     adj1_ref/adj2_ref : (Bt, L, L) f32
#   wb_ref   : (bert_dim, D)    bf16     bb_ref            : (1, D)     f32
#   w1_ref   : (N1, D, D)       bf16     b1_ref            : (N1, L, 1) f32
#   w2_ref   : (N2, D, D)       bf16     b2_ref            : (N2, L, 1) f32
#   o_ref    : (Bt*L, 2*D)      f32
# ----------------------------------------------------------------------------
def _bgcn_fused_kernel(inp_ref, adj1_ref, adj2_ref,
                       wb_ref, bb_ref,
                       w1_ref, b1_ref, w2_ref, b2_ref,
                       o_ref):
    rows = inp_ref.shape[0]                      # Bt * L
    Bt, L, _ = adj1_ref.shape
    D = wb_ref.shape[1]

    # Input projection on the flattened (Bt*L, bert_dim) slab: bf16 MXU inputs,
    # f32 accumulate + f32 bias add.
    x = (jnp.dot(inp_ref[...], wb_ref[...], preferred_element_type=jnp.float32)
         + bb_ref[...])                                            # (Bt*L, D) f32

    def run_branch(adj_ref, w_ref, b_ref):
        adj = adj_ref[...]                                         # (Bt, L, L) f32
        # Layer-invariant row normalizer, computed once per branch (EUP slot ~free).
        inv = pl.reciprocal(jnp.sum(adj, axis=-1, keepdims=True) + 1.0,
                            approx=True)                           # (Bt, L, 1) f32
        adj_bf = adj.astype(jnp.bfloat16)                          # exact for 0/1 entries

        # Static Python loop is fine for small layer counts; switch to
        # lax.fori_loop(..., unroll=True) with dynamic w_ref[i] if stacks grow past ~4.
        h = x                                                      # (Bt*L, D) f32
        for i in range(w_ref.shape[0]):
            wi = jnp.dot(h.astype(jnp.bfloat16), w_ref[i],
                         preferred_element_type=jnp.float32)       # (Bt*L, D) f32
            hw = jnp.einsum('bij,bjd->bid', adj_bf,
                            wi.reshape(Bt, L, D).astype(jnp.bfloat16),
                            preferred_element_type=jnp.float32)    # (Bt, L, D) f32
            # normalize AFTER the matmul in f32 (torch op order), add bias column, relu
            h = jnp.maximum(hw * inv + b_ref[i], 0.0).reshape(rows, D)
        return h                                                   # (Bt*L, D) f32

    h1 = run_branch(adj1_ref, w1_ref, b1_ref)
    h2 = run_branch(adj2_ref, w2_ref, b2_ref)

    # Fused concat via two direct half-stores (no extra VMEM copy / shuffle).
    o_ref[:, :D] = h1.astype(o_ref.dtype)
    o_ref[:, D:] = h2.astype(o_ref.dtype)


# ----------------------------------------------------------------------------
# Batch-block selection: largest divisor Bt of B that keeps the grid length >= 2
# (v7x megacore split) and stops growing once Bt*L already fills the MXU M dim.
# ----------------------------------------------------------------------------
def _choose_batch_block(B, L, target_rows=256):
    best = 1
    for bt in range(1, B + 1):
        if B % bt != 0:
            continue
        if B >= 2 and B // bt < 2:
            continue                              # keep >= 2 grid steps
        if bt * L > target_rows and best * L >= target_rows:
            continue                              # MXU already filled; don't blow up VMEM
        best = bt
    return best


# ----------------------------------------------------------------------------
# Wrapper: one pallas_call for the whole BGCN forward.
# ----------------------------------------------------------------------------
def bgcn_forward(params, input_, adj_b, adj_b_aspect):
    B, L, bert_dim = input_.shape
    D = params["w_b_weight"].shape[1]
    n1 = params["gcn1_w"].shape[0]
    n2 = params["gcn2_w"].shape[0]

    Bt = _choose_batch_block(B, L)
    rows = Bt * L

    # Pre-cast weights & input to bf16 OUTSIDE the kernel (one XLA convert per call,
    # not per grid step): halves DMA bytes and VMEM residency for these blocks.
    inp_bf = input_.reshape(B * L, bert_dim).astype(jnp.bfloat16)
    wb_bf = params["w_b_weight"].astype(jnp.bfloat16)
    w1_bf = params["gcn1_w"].astype(jnp.bfloat16)
    w2_bf = params["gcn2_w"].astype(jnp.bfloat16)

    # Parameter blocks never change index across the grid -> single-buffer them.
    const = dict(pipeline_mode=pl.Buffered(1))

    out = pl.pallas_call(
        _bgcn_fused_kernel,
        out_shape=jax.ShapeDtypeStruct((B * L, 2 * D), jnp.float32),
        grid=(B // Bt,),
        in_specs=[
            pl.BlockSpec((rows, bert_dim), lambda b: (b, 0)),        # input slab (bf16)
            pl.BlockSpec((Bt, L, L), lambda b: (b, 0, 0)),           # adj_b (f32)
            pl.BlockSpec((Bt, L, L), lambda b: (b, 0, 0)),           # adj_b_aspect (f32)
            pl.BlockSpec((bert_dim, D), lambda b: (0, 0), **const),  # W_b (bf16)
            pl.BlockSpec((1, D), lambda b: (0, 0), **const),         # b_b (f32)
            pl.BlockSpec((n1, D, D), lambda b: (0, 0, 0), **const),  # gcn1 stacked W (bf16)
            pl.BlockSpec((n1, L, 1), lambda b: (0, 0, 0), **const),  # gcn1 bias cols (f32)
            pl.BlockSpec((n2, D, D), lambda b: (0, 0, 0), **const),  # gcn2 stacked W (bf16)
            pl.BlockSpec((n2, L, 1), lambda b: (0, 0, 0), **const),  # gcn2 bias cols (f32)
        ],
        out_specs=pl.BlockSpec((rows, 2 * D), lambda b: (b, 0)),
        compiler_params=pltpu.CompilerParams(
            dimension_semantics=("parallel",),   # batch-block axis -> v7x 2-TC split
            # <= ~48 MiB keeps headroom inside v7x's 64 MiB physical VMEM;
            # on v5e/v6e (128 MiB) raise this together with a larger batch block.
            vmem_limit_bytes=48 * 1024 * 1024,
        ),
    )(inp_bf, adj_b, adj_b_aspect,
      wb_bf, params["w_b_bias"].reshape(1, D),
      w1_bf, params["gcn1_bias"],
      w2_bf, params["gcn2_bias"])

    return out.reshape(B, L, 2 * D)


# ----------------------------------------------------------------------------
# Pure-JAX f32 reference (mirrors the torch op order) for a correctness check.
# ----------------------------------------------------------------------------
def bgcn_reference(params, input_, adj_b, adj_b_aspect):
    x = input_ @ params["w_b_weight"] + params["w_b_bias"]

    def branch(h, adj, ws, bs):
        adj_sum = jnp.sum(adj, axis=-1, keepdims=True) + 1.0
        for i in range(ws.shape[0]):
            wi = h @ ws[i]
            h = jax.nn.relu(jnp.einsum("bij,bjd->bid", adj, wi) / adj_sum + bs[i])
        return h

    h1 = branch(x, adj_b, params["gcn1_w"], params["gcn1_bias"])
    h2 = branch(x, adj_b_aspect, params["gcn2_w"], params["gcn2_bias"])
    return jnp.concatenate([h1, h2], axis=-1)


# ----------------------------------------------------------------------------
# Deterministic parameter init (shapes match the torch module __init__);
# per-layer weights are stacked for the fused kernel.
# ----------------------------------------------------------------------------
def init_params(key, bert_dim, bgcn_dim, max_length, bgcn_layers, agcn_layers):
    keys = jax.random.split(key, 6)
    scale = 0.1
    return {
        # torch Linear(bert_dim, bgcn_dim) stored transposed as (Din, Dout)
        "w_b_weight": scale * jax.random.normal(keys[0], (bert_dim, bgcn_dim), jnp.float32),
        "w_b_bias": scale * jax.random.normal(keys[1], (bgcn_dim,), jnp.float32),
        # stacked per-layer Linear(bgcn_dim, bgcn_dim, bias=False) weights
        "gcn1_w": scale * jax.random.normal(keys[2], (bgcn_layers, bgcn_dim, bgcn_dim), jnp.float32),
        # Linear(max_length, 1, bias=False) applied to eye(L) == weight^T -> (L, 1), stacked
        "gcn1_bias": scale * jax.random.normal(keys[3], (bgcn_layers, max_length, 1), jnp.float32),
        "gcn2_w": scale * jax.random.normal(keys[4], (agcn_layers, bgcn_dim, bgcn_dim), jnp.float32),
        "gcn2_bias": scale * jax.random.normal(keys[5], (agcn_layers, max_length, 1), jnp.float32),
    }


if __name__ == "__main__":
    # small shapes consistent with the module (batch kept small but >1 block so the
    # batch-blocked grid and the megacore split are exercised)
    B = 8              # batch
    L = 8              # opt.max_length (seq len)
    BERT_DIM = 32      # opt.bert_dim
    BGCN_DIM = 32      # opt.bgcn_dim
    BGCN_LAYERS = 2    # opt.BGCNlayer_num
    AGCN_LAYERS = 2    # opt.AGCNlayer_num

    root = jax.random.PRNGKey(0)
    k_param, k_x, k_a1, k_a2 = jax.random.split(root, 4)

    params = init_params(k_param, BERT_DIM, BGCN_DIM, L, BGCN_LAYERS, AGCN_LAYERS)

    input_ = jax.random.normal(k_x, (B, L, BERT_DIM), jnp.float32)
    # adjacency matrices: 0/1 entries like typical dependency-graph adjacencies
    adj_b = (jax.random.uniform(k_a1, (B, L, L)) > 0.5).astype(jnp.float32)
    adj_b_aspect = (jax.random.uniform(k_a2, (B, L, L)) > 0.5).astype(jnp.float32)

    out = jax.jit(bgcn_forward)(params, input_, adj_b, adj_b_aspect)
    out = jax.block_until_ready(out)

    assert out.shape == (B, L, 2 * BGCN_DIM), out.shape

    # correctness vs. exact f32 reference (loose tolerance: bf16 MXU inputs + approx reciprocal)
    ref = bgcn_reference(params, input_, adj_b, adj_b_aspect)
    assert bool(jnp.allclose(out, ref, rtol=5e-2, atol=5e-2))

    print("KERNEL_OK")
</pallas_src>

<mosaic_0001>
module attributes {stable_mosaic.version = 11 : i64} {
  func.func @_bgcn_fused_kernel(%arg0: i32, %arg1: memref<32x32xbf16, #tpu.memory_space<vmem>>, %arg2: memref<4x8x8xf32, #tpu.memory_space<vmem>>, %arg3: memref<4x8x8xf32, #tpu.memory_space<vmem>>, %arg4: memref<32x32xbf16, #tpu.memory_space<vmem>>, %arg5: memref<1x32xf32, #tpu.memory_space<vmem>>, %arg6: memref<2x32x32xbf16, #tpu.memory_space<vmem>>, %arg7: memref<2x8x1xf32, #tpu.memory_space<vmem>>, %arg8: memref<2x32x32xbf16, #tpu.memory_space<vmem>>, %arg9: memref<2x8x1xf32, #tpu.memory_space<vmem>>, %arg10: memref<32x64xf32, #tpu.memory_space<vmem>>) attributes {dimension_semantics = [#tpu.dimension_semantics<parallel>], iteration_bounds = array<i64: 2>, scalar_prefetch = 0 : i64, scratch_operands = 0 : i64, tpu.core_type = #tpu.core_type<tc>, window_params = [{transform_indices = @transform_0, window_bounds = array<i64: 32, 32>}, {transform_indices = @transform_1, window_bounds = array<i64: 4, 8, 8>}, {transform_indices = @transform_2, window_bounds = array<i64: 4, 8, 8>}, {pipeline_mode = #tpu.pipeline_mode<synchronous>, transform_indices = @transform_3, window_bounds = array<i64: 32, 32>}, {pipeline_mode = #tpu.pipeline_mode<synchronous>, transform_indices = @transform_4, window_bounds = array<i64: 1, 32>}, {pipeline_mode = #tpu.pipeline_mode<synchronous>, transform_indices = @transform_5, window_bounds = array<i64: 2, 32, 32>}, {pipeline_mode = #tpu.pipeline_mode<synchronous>, transform_indices = @transform_6, window_bounds = array<i64: 2, 8, 1>}, {pipeline_mode = #tpu.pipeline_mode<synchronous>, transform_indices = @transform_7, window_bounds = array<i64: 2, 32, 32>}, {pipeline_mode = #tpu.pipeline_mode<synchronous>, transform_indices = @transform_8, window_bounds = array<i64: 2, 8, 1>}, {transform_indices = @transform_9, window_bounds = array<i64: 32, 64>}]} {
    %c0 = arith.constant 0 : index
    %c0_0 = arith.constant 0 : index
    %0 = vector.load %arg1[%c0, %c0_0] : memref<32x32xbf16, #tpu.memory_space<vmem>>, vector<32x32xbf16>
    %c0_1 = arith.constant 0 : index
    %c0_2 = arith.constant 0 : index
    %1 = vector.load %arg4[%c0_1, %c0_2] : memref<32x32xbf16, #tpu.memory_space<vmem>>, vector<32x32xbf16>
    %cst = arith.constant dense<0.000000e+00> : vector<32x32xf32>
    %2 = tpu.matmul %0, %1, %cst {dimension_numbers = #tpu.dot_dimension_numbers<[1], [0], [0], [1], [0, 0, 1, 1], [], []>} : vector<32x32xbf16>, vector<32x32xbf16>, vector<32x32xf32> -> vector<32x32xf32>
    %c0_3 = arith.constant 0 : index
    %c0_4 = arith.constant 0 : index
    %3 = vector.load %arg5[%c0_3, %c0_4] : memref<1x32xf32, #tpu.memory_space<vmem>>, vector<1x32xf32>
    %4 = vector.broadcast %3 : vector<1x32xf32> to vector<32x32xf32>
    %5 = arith.addf %2, %4 : vector<32x32xf32>
    %c0_5 = arith.constant 0 : index
    %c0_6 = arith.constant 0 : index
    %c0_7 = arith.constant 0 : index
    %6 = vector.load %arg2[%c0_5, %c0_6, %c0_7] : memref<4x8x8xf32, #tpu.memory_space<vmem>>, vector<4x8x8xf32>
    %cst_8 = arith.constant dense<0.000000e+00> : vector<4x8xf32>
    %7 = vector.multi_reduction <add>, %6, %cst_8 [2] : vector<4x8x8xf32> to vector<4x8xf32>
    %8 = vector.shape_cast %7 : vector<4x8xf32> to vector<4x8x1xf32>
    %cst_9 = arith.constant 1.000000e+00 : f32
    %9 = vector.broadcast %cst_9 : f32 to vector<4x8x1xf32>
    %10 = arith.addf %8, %9 : vector<4x8x1xf32>
    %11 = tpu.reciprocal %10 {approx = true} : vector<4x8x1xf32> -> vector<4x8x1xf32>
    %12 = arith.truncf %6 : vector<4x8x8xf32> to vector<4x8x8xbf16>
    %13 = arith.truncf %5 : vector<32x32xf32> to vector<32x32xbf16>
    %c0_10 = arith.constant 0 : index
    %c0_11 = arith.constant 0 : index
    %c0_12 = arith.constant 0 : index
    %14 = vector.load %arg6[%c0_10, %c0_11, %c0_12] : memref<2x32x32xbf16, #tpu.memory_space<vmem>>, vector<1x32x32xbf16>
    %15 = vector.shape_cast %14 : vector<1x32x32xbf16> to vector<32x32xbf16>
    %cst_13 = arith.constant dense<0.000000e+00> : vector<32x32xf32>
    %16 = tpu.matmul %13, %15, %cst_13 {dimension_numbers = #tpu.dot_dimension_numbers<[1], [0], [0], [1], [0, 0, 1, 1], [], []>} : vector<32x32xbf16>, vector<32x32xbf16>, vector<32x32xf32> -> vector<32x32xf32>
    %17 = vector.shape_cast %16 : vector<32x32xf32> to vector<4x8x32xf32>
    %18 = arith.truncf %17 : vector<4x8x32xf32> to vector<4x8x32xbf16>
    "tpu.trace_start"() <{level = 10 : i32, message = "bij,bjd->bid"}> : () -> ()
    %cst_14 = arith.constant dense<0.000000e+00> : vector<4x8x32xf32>
    %19 = tpu.matmul %12, %18, %cst_14 {dimension_numbers = #tpu.dot_dimension_numbers<[2], [1], [1], [2], [0, 0, 0, 1, 1, 2], [0], [0]>} : vector<4x8x8xbf16>, vector<4x8x32xbf16>, vector<4x8x32xf32> -> vector<4x8x32xf32>
    "tpu.trace_stop"() : () -> ()
    %20 = vector.broadcast %11 : vector<4x8x1xf32> to vector<4x8x32xf32>
    %21 = arith.mulf %19, %20 : vector<4x8x32xf32>
    %c0_15 = arith.constant 0 : index
    %c0_16 = arith.constant 0 : index
    %c0_17 = arith.constant 0 : index
    %22 = vector.load %arg7[%c0_15, %c0_16, %c0_17] : memref<2x8x1xf32, #tpu.memory_space<vmem>>, vector<1x8x1xf32>
    %23 = vector.shape_cast %22 : vector<1x8x1xf32> to vector<8x1xf32>
    %24 = vector.shape_cast %23 : vector<8x1xf32> to vector<1x8x1xf32>
    %25 = vector.broadcast %24 : vector<1x8x1xf32> to vector<4x8x32xf32>
    %26 = arith.addf %21, %25 : vector<4x8x32xf32>
    %cst_18 = arith.constant 0.000000e+00 : f32
    %27 = vector.broadcast %cst_18 : f32 to vector<4x8x32xf32>
    %28 = arith.maximumf %26, %27 : vector<4x8x32xf32>
    %29 = vector.shape_cast %28 : vector<4x8x32xf32> to vector<32x32xf32>
    %30 = arith.truncf %29 : vector<32x32xf32> to vector<32x32xbf16>
    %c1 = arith.constant 1 : index
    %c0_19 = arith.constant 0 : index
    %c0_20 = arith.constant 0 : index
    %31 = vector.load %arg6[%c1, %c0_19, %c0_20] : memref<2x32x32xbf16, #tpu.memory_space<vmem>>, vector<1x32x32xbf16>
    %32 = vector.shape_cast %31 : vector<1x32x32xbf16> to vector<32x32xbf16>
    %cst_21 = arith.constant dense<0.000000e+00> : vector<32x32xf32>
    %33 = tpu.matmul %30, %32, %cst_21 {dimension_numbers = #tpu.dot_dimension_numbers<[1], [0], [0], [1], [0, 0, 1, 1], [], []>} : vector<32x32xbf16>, vector<32x32xbf16>, vector<32x32xf32> -> vector<32x32xf32>
    %34 = vector.shape_cast %33 : vector<32x32xf32> to vector<4x8x32xf32>
    %35 = arith.truncf %34 : vector<4x8x32xf32> to vector<4x8x32xbf16>
    "tpu.trace_start"() <{level = 10 : i32, message = "bij,bjd->bid"}> : () -> ()
    %cst_22 = arith.constant dense<0.000000e+00> : vector<4x8x32xf32>
    %36 = tpu.matmul %12, %35, %cst_22 {dimension_numbers = #tpu.dot_dimension_numbers<[2], [1], [1], [2], [0, 0, 0, 1, 1, 2], [0], [0]>} : vector<4x8x8xbf16>, vector<4x8x32xbf16>, vector<4x8x32xf32> -> vector<4x8x32xf32>
    "tpu.trace_stop"() : () -> ()
    %37 = vector.broadcast %11 : vector<4x8x1xf32> to vector<4x8x32xf32>
    %38 = arith.mulf %36, %37 : vector<4x8x32xf32>
    %c1_23 = arith.constant 1 : index
    %c0_24 = arith.constant 0 : index
    %c0_25 = arith.constant 0 : index
    %39 = vector.load %arg7[%c1_23, %c0_24, %c0_25] : memref<2x8x1xf32, #tpu.memory_space<vmem>>, vector<1x8x1xf32>
    %40 = vector.shape_cast %39 : vector<1x8x1xf32> to vector<8x1xf32>
    %41 = vector.shape_cast %40 : vector<8x1xf32> to vector<1x8x1xf32>
    %42 = vector.broadcast %41 : vector<1x8x1xf32> to vector<4x8x32xf32>
    %43 = arith.addf %38, %42 : vector<4x8x32xf32>
    %cst_26 = arith.constant 0.000000e+00 : f32
    %44 = vector.broadcast %cst_26 : f32 to vector<4x8x32xf32>
    %45 = arith.maximumf %43, %44 : vector<4x8x32xf32>
    %46 = vector.shape_cast %45 : vector<4x8x32xf32> to vector<32x32xf32>
    %c0_27 = arith.constant 0 : index
    %c0_28 = arith.constant 0 : index
    %c0_29 = arith.constant 0 : index
    %47 = vector.load %arg3[%c0_27, %c0_28, %c0_29] : memref<4x8x8xf32, #tpu.memory_space<vmem>>, vector<4x8x8xf32>
    %cst_30 = arith.constant dense<0.000000e+00> : vector<4x8xf32>
    %48 = vector.multi_reduction <add>, %47, %cst_30 [2] : vector<4x8x8xf32> to vector<4x8xf32>
    %49 = vector.shape_cast %48 : vector<4x8xf32> to vector<4x8x1xf32>
    %cst_31 = arith.constant 1.000000e+00 : f32
    %50 = vector.broadcast %cst_31 : f32 to vector<4x8x1xf32>
    %51 = arith.addf %49, %50 : vector<4x8x1xf32>
    %52 = tpu.reciprocal %51 {approx = true} : vector<4x8x1xf32> -> vector<4x8x1xf32>
    %53 = arith.truncf %47 : vector<4x8x8xf32> to vector<4x8x8xbf16>
    %54 = arith.truncf %5 : vector<32x32xf32> to vector<32x32xbf16>
    %c0_32 = arith.constant 0 : index
    %c0_33 = arith.constant 0 : index
    %c0_34 = arith.constant 0 : index
    %55 = vector.load %arg8[%c0_32, %c0_33, %c0_34] : memref<2x32x32xbf16, #tpu.memory_space<vmem>>, vector<1x32x32xbf16>
    %56 = vector.shape_cast %55 : vector<1x32x32xbf16> to vector<32x32xbf16>
    %cst_35 = arith.constant dense<0.000000e+00> : vector<32x32xf32>
    %57 = tpu.matmul %54, %56, %cst_35 {dimension_numbers = #tpu.dot_dimension_numbers<[1], [0], [0], [1], [0, 0, 1, 1], [], []>} : vector<32x32xbf16>, vector<32x32xbf16>, vector<32x32xf32> -> vector<32x32xf32>
    %58 = vector.shape_cast %57 : vector<32x32xf32> to vector<4x8x32xf32>
    %59 = arith.truncf %58 : vector<4x8x32xf32> to vector<4x8x32xbf16>
    "tpu.trace_start"() <{level = 10 : i32, message = "bij,bjd->bid"}> : () -> ()
    %cst_36 = arith.constant dense<0.000000e+00> : vector<4x8x32xf32>
    %60 = tpu.matmul %53, %59, %cst_36 {dimension_numbers = #tpu.dot_dimension_numbers<[2], [1], [1], [2], [0, 0, 0, 1, 1, 2], [0], [0]>} : vector<4x8x8xbf16>, vector<4x8x32xbf16>, vector<4x8x32xf32> -> vector<4x8x32xf32>
    "tpu.trace_stop"() : () -> ()
    %61 = vector.broadcast %52 : vector<4x8x1xf32> to vector<4x8x32xf32>
    %62 = arith.mulf %60, %61 : vector<4x8x32xf32>
    %c0_37 = arith.constant 0 : index
    %c0_38 = arith.constant 0 : index
    %c0_39 = arith.constant 0 : index
    %63 = vector.load %arg9[%c0_37, %c0_38, %c0_39] : memref<2x8x1xf32, #tpu.memory_space<vmem>>, vector<1x8x1xf32>
    %64 = vector.shape_cast %63 : vector<1x8x1xf32> to vector<8x1xf32>
    %65 = vector.shape_cast %64 : vector<8x1xf32> to vector<1x8x1xf32>
    %66 = vector.broadcast %65 : vector<1x8x1xf32> to vector<4x8x32xf32>
    %67 = arith.addf %62, %66 : vector<4x8x32xf32>
    %cst_40 = arith.constant 0.000000e+00 : f32
    %68 = vector.broadcast %cst_40 : f32 to vector<4x8x32xf32>
    %69 = arith.maximumf %67, %68 : vector<4x8x32xf32>
    %70 = vector.shape_cast %69 : vector<4x8x32xf32> to vector<32x32xf32>
    %71 = arith.truncf %70 : vector<32x32xf32> to vector<32x32xbf16>
    %c1_41 = arith.constant 1 : index
    %c0_42 = arith.constant 0 : index
    %c0_43 = arith.constant 0 : index
    %72 = vector.load %arg8[%c1_41, %c0_42, %c0_43] : memref<2x32x32xbf16, #tpu.memory_space<vmem>>, vector<1x32x32xbf16>
    %73 = vector.shape_cast %72 : vector<1x32x32xbf16> to vector<32x32xbf16>
    %cst_44 = arith.constant dense<0.000000e+00> : vector<32x32xf32>
    %74 = tpu.matmul %71, %73, %cst_44 {dimension_numbers = #tpu.dot_dimension_numbers<[1], [0], [0], [1], [0, 0, 1, 1], [], []>} : vector<32x32xbf16>, vector<32x32xbf16>, vector<32x32xf32> -> vector<32x32xf32>
    %75 = vector.shape_cast %74 : vector<32x32xf32> to vector<4x8x32xf32>
    %76 = arith.truncf %75 : vector<4x8x32xf32> to vector<4x8x32xbf16>
    "tpu.trace_start"() <{level = 10 : i32, message = "bij,bjd->bid"}> : () -> ()
    %cst_45 = arith.constant dense<0.000000e+00> : vector<4x8x32xf32>
    %77 = tpu.matmul %53, %76, %cst_45 {dimension_numbers = #tpu.dot_dimension_numbers<[2], [1], [1], [2], [0, 0, 0, 1, 1, 2], [0], [0]>} : vector<4x8x8xbf16>, vector<4x8x32xbf16>, vector<4x8x32xf32> -> vector<4x8x32xf32>
    "tpu.trace_stop"() : () -> ()
    %78 = vector.broadcast %52 : vector<4x8x1xf32> to vector<4x8x32xf32>
    %79 = arith.mulf %77, %78 : vector<4x8x32xf32>
    %c1_46 = arith.constant 1 : index
    %c0_47 = arith.constant 0 : index
    %c0_48 = arith.constant 0 : index
    %80 = vector.load %arg9[%c1_46, %c0_47, %c0_48] : memref<2x8x1xf32, #tpu.memory_space<vmem>>, vector<1x8x1xf32>
    %81 = vector.shape_cast %80 : vector<1x8x1xf32> to vector<8x1xf32>
    %82 = vector.shape_cast %81 : vector<8x1xf32> to vector<1x8x1xf32>
    %83 = vector.broadcast %82 : vector<1x8x1xf32> to vector<4x8x32xf32>
    %84 = arith.addf %79, %83 : vector<4x8x32xf32>
    %cst_49 = arith.constant 0.000000e+00 : f32
    %85 = vector.broadcast %cst_49 : f32 to vector<4x8x32xf32>
    %86 = arith.maximumf %84, %85 : vector<4x8x32xf32>
    %87 = vector.shape_cast %86 : vector<4x8x32xf32> to vector<32x32xf32>
    %c0_50 = arith.constant 0 : index
    %c0_51 = arith.constant 0 : index
    %88 = vector.load %arg10[%c0_50, %c0_51] : memref<32x64xf32, #tpu.memory_space<vmem>>, vector<32x32xf32>
    tpu.vector_store %arg10[%c0_50, %c0_51], %46 {strides = array<i32>} : memref<32x64xf32, #tpu.memory_space<vmem>>, vector<32x32xf32>,
    %c0_52 = arith.constant 0 : index
    %c32 = arith.constant 32 : index
    %89 = vector.load %arg10[%c0_52, %c32] : memref<32x64xf32, #tpu.memory_space<vmem>>, vector<32x32xf32>
    tpu.vector_store %arg10[%c0_52, %c32], %87 {strides = array<i32>} : memref<32x64xf32, #tpu.memory_space<vmem>>, vector<32x32xf32>,
    return
  }
  func.func @transform_0(%arg0: i32) -> (i32, i32) {
    %c0_i32 = arith.constant 0 : i32
    %c0_i32_0 = arith.constant 0 : i32
    return %arg0, %c0_i32 : i32, i32
  }
  func.func @transform_1(%arg0: i32) -> (i32, i32, i32) {
    %c0_i32 = arith.constant 0 : i32
    %c0_i32_0 = arith.constant 0 : i32
    %c0_i32_1 = arith.constant 0 : i32
    return %arg0, %c0_i32, %c0_i32_0 : i32, i32, i32
  }
  func.func @transform_2(%arg0: i32) -> (i32, i32, i32) {
    %c0_i32 = arith.constant 0 : i32
    %c0_i32_0 = arith.constant 0 : i32
    %c0_i32_1 = arith.constant 0 : i32
    return %arg0, %c0_i32, %c0_i32_0 : i32, i32, i32
  }
  func.func @transform_3(%arg0: i32) -> (i32, i32) {
    %c0_i32 = arith.constant 0 : i32
    %c0_i32_0 = arith.constant 0 : i32
    %c0_i32_1 = arith.constant 0 : i32
    return %c0_i32, %c0_i32_0 : i32, i32
  }
  func.func @transform_4(%arg0: i32) -> (i32, i32) {
    %c0_i32 = arith.constant 0 : i32
    %c0_i32_0 = arith.constant 0 : i32
    %c0_i32_1 = arith.constant 0 : i32
    return %c0_i32, %c0_i32_0 : i32, i32
  }
  func.func @transform_5(%arg0: i32) -> (i32, i32, i32) {
    %c0_i32 = arith.constant 0 : i32
    %c0_i32_0 = arith.constant 0 : i32
    %c0_i32_1 = arith.constant 0 : i32
    %c0_i32_2 = arith.constant 0 : i32
    return %c0_i32, %c0_i32_0, %c0_i32_1 : i32, i32, i32
  }
  func.func @transform_6(%arg0: i32) -> (i32, i32, i32) {
    %c0_i32 = arith.constant 0 : i32
    %c0_i32_0 = arith.constant 0 : i32
    %c0_i32_1 = arith.constant 0 : i32
    %c0_i32_2 = arith.constant 0 : i32
    return %c0_i32, %c0_i32_0, %c0_i32_1 : i32, i32, i32
  }
  func.func @transform_7(%arg0: i32) -> (i32, i32, i32) {
    %c0_i32 = arith.constant 0 : i32
    %c0_i32_0 = arith.constant 0 : i32
    %c0_i32_1 = arith.constant 0 : i32
    %c0_i32_2 = arith.constant 0 : i32
    return %c0_i32, %c0_i32_0, %c0_i32_1 : i32, i32, i32
  }
  func.func @transform_8(%arg0: i32) -> (i32, i32, i32) {
    %c0_i32 = arith.constant 0 : i32
    %c0_i32_0 = arith.constant 0 : i32
    %c0_i32_1 = arith.constant 0 : i32
    %c0_i32_2 = arith.constant 0 : i32
    return %c0_i32, %c0_i32_0, %c0_i32_1 : i32, i32, i32
  }
  func.func @transform_9(%arg0: i32) -> (i32, i32) {
    %c0_i32 = arith.constant 0 : i32
    %c0_i32_0 = arith.constant 0 : i32
    return %arg0, %c0_i32 : i32, i32
  }
}

</mosaic_0001>

<bundles_post_ra>
// kernel: bgcn_forward.1
= control target key start
LH: loop header
LB: loop body
LE: loop exit
PB: predicated region body
PF: predicated region fallthrough
CT: control target
= control target key end

     0   :  { %14 = vsyncpa [#allocation3], 0  ;;  %s1742_s0 = inlined_call_operand.vmem [shape: bf16[64,32], index: 0, kind: input, shape index: {}]   ;;  %s1743_s1 = inlined_call_operand.vmem [shape: f32[8,8,8], index: 1, kind: input, shape index: {}]   ;;  %s1744_s2 = inlined_call_operand.vmem [shape: f32[8,8,8], index: 2, kind: input, shape index: {}]   ;;  %s1745_s3 = inlined_call_operand.vmem [shape: bf16[32,32], index: 3, kind: input, shape index: {}]   ;;  %s1746_s4 = inlined_call_operand.vmem [shape: f32[1,32], index: 4, kind: input, shape index: {}]   ;;  %s1747_s5 = inlined_call_operand.vmem [shape: bf16[2,32,32], index: 5, kind: input, shape index: {}]   ;;  %s1748_s6 = inlined_call_operand.vmem [shape: f32[2,8,1], index: 6, kind: input, shape index: {}]   ;;  %s1749_s7 = inlined_call_operand.vmem [shape: bf16[2,32,32], index: 7, kind: input, shape index: {}]   ;;  %s1750_s8 = inlined_call_operand.vmem [shape: f32[2,8,1], index: 8, kind: input, shape index: {}]   ;;  %s1751_s9 = inlined_call_operand.hbm [shape: f32[64,64], index: 9, kind: output, shape index: {}]  }
   0x1   :  { %16 = vsyncpa [#allocation3 + $0x1], 0  ;;  %s1454_s30 = smov 0   ;;  %s1456_s10 = smov 0  }
   0x2   :  { %s1458_s11 = smov 0   ;;  %s1460_s12 = smov 0  }
   0x3 LB: > { %s1475_s13 = sadd.s32 4294967295, %s1398_s12   ;;  %s1160_s14 = sadd.s32 4294967294, %s1398_s12   ;;  %s1398_s12 = sphi %s1460_s12, %s1757_s12   ;;  %s1394_s11 = sphi %s1458_s11, %s1756_s11   ;;  %s1390_s10 = sphi %s1456_s10, %s1755_s10   ;;  %s1386_s30 = sphi %s1454_s30, %s1754_s30  }
   0x4   : > { %s1479_s15 = sadd.s32 1, %s1398_s12   ;;  %s233_s16 = sadd.s32 1, %s1394_s11 }
   0x5   : > { %s230_s17 = ssub.s32 %s1398_s12, %s1479_s15  ;;  %p243_p0 = scmp.ne.s32.totalorder %s1394_s11, %s1390_s10 }
   0x6   : > { %p231_p1 = scmp.eq.s32.totalorder %s230_s17, 0  ;;  %p244_p2 = scmp.eq.s32.totalorder %s1475_s13, 1 }
   0x7   : > { %p249_p3 = scmp.ne.s32.totalorder %s1390_s10, %s1386_s30  ;;  %p250_p4 = scmp.eq.s32.totalorder %s1160_s14, 1 }
   0x8   : > { %s1490_s18 = scalar_select %p231_p1, %s1394_s11, %s233_s16  }
   0x9   : > { %p1492_p5 = por %p244_p2, %p243_p0  ;;  %p1496_p6 = por %p250_p4, %p249_p3 }
   0xa   : > { %p1163_p7 = scmp.ge.s32.totalorder %s1398_s12, 1  ;;  %p313_p8 = scmp.lt.s32.totalorder %s1398_s12, 3 }
   0xc   : > { %p314_p9 = pnand %p1163_p7, %p313_p8 }
   0xd   : > { %s1165_s23 = sshll.u32 (!%p314_p9), %s1475_s13, 2  ;;  %s356_s22 = sand.u32 (!%p314_p9), 1, %s1390_s10  }
   0xe   : > { %317 = sbr.rel (%p314_p9) target bundleno = 1284 (0x504), region = 56  ;;  %p360_p10 = scmp.lt.s32.totalorder (!%p314_p9), %s1165_s23, 7 }
   0xf   : > { %s1164_s24 = sshll.u32 (!%p314_p9), %s356_s22, 5  ;;  %s1401_s16 = smov (!%p314_p9), 32  }
  0x10   : > { %s1638_s25 = scalar_lea.vmem (!%p314_p9), [#allocation2], %s1164_s24  ;;  %s1272_s17 = sshll.u32 (!%p314_p9), %s1475_s13, 5 }
  0x11   : > { %s1071_s28 = sshll.u32 (!%p314_p9), %s1638_s25, 4  ;;  %s1072_s28 = int_to_ptr.vmem [resolvable:$true] %s1071_s28 }
  0x13   : > { %v1263_v0 = vld [vmem:[%s1745_s3 + $0x8] sm:$0xff]  ;;  %v1262_v1 = vld [vmem:[%s1745_s3] sm:$0xff]  ;;  %s1759_s23 = smov (!%p360_p10, %s1165_s23), 7  ;;  %vm413_vm0 = vcmask 261120   ;;  %v1400_v7 = vmov 0   ;;  %vm443_vm1 = vcmask 64512  }
  0x14   : > { %426 = vmatpush.bf16.msra.mxu0 %v1263_v0  ;;  %s1166_s26 = sshll.u32 %s1759_s23, 2  ;;  %v1265_v4 = vld [vmem:[%s1747_s5 + $0x8] sm:$0xff]  ;;  %v1264_v5 = vld [vmem:[%s1747_s5] sm:$0xff]  ;;  %1316 = vset.pattern.permute.xlu1 %v1400_v7  ;;  %s1168_s27 = sshll.u32 %s1759_s23, 3  ;;  %vm518_vm2 = vcmask 1043456   ;;  %v1267_v43 = vld [vmem:[%s1747_s5 + $0x18] sm:$0xff] }
  0x15   : > { %s363_s29 = scalar_lea.vmem %s1742_s0, %s1166_s26  ;;  %498 = vmatpush.bf16.msra.mxu1 %v1265_v4  ;;  %v596_v6 = vld [vmem:[%s1748_s6] sm:$0xff]  ;;  %1317 = vset.pattern.permute.xlu2 %v1400_v7  ;;  %s369_s14 = scalar_lea.vmem %s1743_s1, %s1168_s27  ;;  %v1266_v44 = vld [vmem:[%s1747_s5 + $0x10] sm:$0xff]  ;;  %vm1053_vm3 = vcmask 523520  }
  0x16   : > { %v1260_v2 = vld [vmem:[%s363_s29] sm:$0xff]  ;;  %v1261_v3 = vld [vmem:[%s363_s29 + $0x8] sm:$0xff]  ;;  %599 = vperm.xlu1 %1316, %v596_v6   ;;  %1318 = vset.pattern.permute.xlu0 %v1400_v7  ;;  %v441_v23 = vld [vmem:[%s369_s14 + $0x10] sm:$0xff]  ;;  %s1592_s26 = scalar_lea.vmem %s1744_s2, %s1168_s27  ;;  %s1059_s23 = scalar_lea.sflag [#allocation3], %s356_s22 }
  0x17   : > { %v1319_v9 = vld [vmem:[%s1746_s4] ss:$0 sm:$0xff]  ;;  %v440_v21 = vld [vmem:[%s369_s14 + $0x8] sm:$0xff]  ;;  %v450_v24 = vsel %vm443_vm1, %v441_v23, 0.0  ;;  %v442_v25 = vld [vmem:[%s369_s14 + $0x18] sm:$0xff]  ;;  %v1558_v38 = vpack.c.bf16 %v441_v23, %v441_v23 }
  0x18   : > { %427 = vmatpush.bf16.msra.mxu0 %v1262_v1  ;;  %v439_v19 = vld [vmem:[%s369_s14] sm:$0xff]  ;;  %v447_v22 = vsel %vm443_vm1, %v440_v21, 0.0  ;;  %v453_v26 = vsel %vm443_vm1, %v442_v25, 0.0  ;;  %v1553_v34 = vpack.c.bf16 %v440_v21, %v440_v21  ;;  %v1563_v42 = vpack.c.bf16 %v442_v25, %v442_v25 }
  0x19   : > { %499 = vmatpush.bf16.msra.mxu1 %v1264_v5  ;;  %v444_v20 = vsel %vm443_vm1, %v439_v19, 0.0  ;;  %454 = vadd.xlane.f32.xlu2 %v453_v26  ;;  %v1548_v30 = vpack.c.bf16 %v439_v19, %v439_v19  ;;  %v1269_v26 = vld [vmem:[%s1749_s7 + $0x8] sm:$0xff] }
  0x1a   : > { %445 = vadd.xlane.f32.xlu0 %v444_v20  ;;  %v888_v20 = vld [vmem:[%s1750_s8] sm:$0xff] }
  0x1b   : > { %1187 = vmatmul.msk.bf16.vlgmr.msra.gmra.mxu0 %vm413_vm0, %v1260_v2 }
  0x22   : > { %448 = vadd.xlane.f32.xlu0 %v447_v22 }
  0x2b   : > { %1188 = vmatmul.msk.bf16.gmra.mxu0 %vm413_vm0, %v1261_v3 }
  0x40   : > { %451 = vadd.xlane.f32.xlu1 %v450_v24 }
  0x88   : > { %v600_v48 = vpop.permute.xlu1 %599 }
  0x8c   : > { %v455_v60 = vpop.xlane.xlu2 %454 }
  0x8d   : > { %v446_v45 = vpop.xlane.xlu0 %445  ;;  %v459_v62 = vadd.f32 1.0, %v455_v60 }
  0x8e   : > { %v456_v46 = vadd.f32 1.0, %v446_v45 }
  0x90   : > { %1320 = vrcp.f32 %v456_v46 }
  0x95   : > { %v449_v47 = vpop.xlane.xlu0 %448 }
  0x96   : > { %v457_v49 = vadd.f32 1.0, %v449_v47  ;;  %v1573_v51 = vpop.eup %1320  ;;  %v743_v47 = vld [vmem:[%s1592_s26 + $0x10] sm:$0xff] }
  0x98   : > { %v429_v8 = vpop.f32.mrf.mxu0  ;;  %1322 = vrcp.f32 %v457_v49  ;;  %v751_v49 = vsel %vm443_vm1, %v743_v47, 0.0 }
  0x99   : > { %v430_v11 = vadd.f32 %v1319_v9, %v429_v8 }
  0x9e   : > { %v1576_v54 = vpop.eup %1322 }
  0xa0   : > { %v431_v10 = vpop.f32.mrf.mxu0 }
  0xa1   : > { %v432_v12 = vadd.f32 %v1319_v9, %v431_v10 }
  0xa3   : > { %v1529_v13 = vpack.c.bf16 %v432_v12, %v430_v11 }
  0xa5   : > { %1197 = vmatmul.msk.bf16.vlgmr.msra.gmra.mxu1 %vm413_vm0, %v1529_v13 }
  0xa8   : > { %v434_v14 = vpop.f32.mrf.mxu0 }
  0xa9   : > { %v435_v15 = vadd.f32 %v1319_v9, %v434_v14 }
  0xb0   : > { %v436_v16 = vpop.f32.mrf.mxu0 }
  0xb1   : > { %v437_v17 = vadd.f32 %v1319_v9, %v436_v16 }
  0xb3   : > { %v1533_v18 = vpack.c.bf16 %v437_v17, %v435_v15  ;;  %v452_v53 = vpop.xlane.xlu1 %451  ;;  %v1595_v17 = vld [vmem:[%s1592_s26] sm:$0xff] }
  0xb4   : > { %v458_v55 = vadd.f32 1.0, %v452_v53  ;;  %v745_v19 = vsel %vm443_vm1, %v1595_v17, 0.0  ;;  %v1653_v60 = vpack.c.bf16 %v1595_v17, %v1595_v17  ;;  %v1270_v17 = vld [vmem:[%s1749_s7 + $0x10] sm:$0xff] }
  0xb5   : > { %1198 = vmatmul.msk.bf16.gmra.mxu1 %vm413_vm0, %v1533_v18  ;;  %746 = vadd.xlane.f32.xlu2 %v745_v19 }
  0xb6   : > { %1324 = vrcp.f32 %v458_v55  ;;  %v744_v55 = vld [vmem:[%s1592_s26 + $0x18] sm:$0xff] }
  0xb7   : > { %1326 = vrcp.f32 %v459_v62 }
  0xbc   : > { %v1580_v4 = vpop.eup %1324 }
  0xbd   : > { %v1583_v6 = vpop.eup %1326 }
  0xcd   : > { %891 = vperm.xlu2 %1317, %v888_v20  }
 0x122   : > { %v501_v27 = vpop.f32.mrf.mxu1 }
 0x123   : > { %v511_v28 = vpack.c.bf16 %v501_v27, %v501_v27 }
 0x125   : > { %v520_v29 = vsel %vm518_vm2, %v511_v28, 0  ;;  %v1268_v28 = vld [vmem:[%s1749_s7] sm:$0xff] }
 0x126   : > { %529 = vmatpush.bf16.msra.mxu2 %v520_v29  ;;  %v1221_v29 = vld [vmem:[%s1748_s6 + $0x8] sm:$0xff] }
 0x127   : > { %730 = vperm.xlu2 %1317, %v1221_v29  }
 0x129   : > { %1199 = vmatmul.msk.bf16.vlgmr.msra.gmra.mxu2 %vm443_vm1, %v1548_v30 }
 0x12a   : > { %v503_v31 = vpop.f32.mrf.mxu1 }
 0x12b   : > { %v512_v32 = vpack.c.bf16 %v503_v31, %v503_v31 }
 0x12d   : > { %v539_v33 = vsel %vm518_vm2, %v512_v32, 0 }
 0x12e   : > { %548 = vmatpush.bf16.msra.mxu3 %v539_v33 }
 0x131   : > { %1200 = vmatmul.msk.bf16.vlgmr.msra.gmra.mxu3 %vm443_vm1, %v1553_v34 }
 0x132   : > { %v506_v35 = vpop.f32.mrf.mxu1 }
 0x133   : > { %v513_v36 = vpack.c.bf16 %v506_v35, %v506_v35 }
 0x135   : > { %v558_v37 = vsel %vm518_vm2, %v513_v36, 0  ;;  %v1627_v36 = vpop.xlane.xlu2 %746 }
 0x136   : > { %567 = vmatpush.bf16.msrb.mxu2 %v558_v37  ;;  %v757_v20 = vadd.f32 1.0, %v1627_v36 }
 0x138   : > { %1328 = vrcp.f32 %v757_v20 }
 0x139   : > { %1201 = vmatmul.msk.bf16.vlgmr.msrb.gmra.mxu2 %vm443_vm1, %v1558_v38 }
 0x13a   : > { %v508_v39 = vpop.f32.mrf.mxu1  ;;  %641 = vmatpush.bf16.msra.mxu2 %v1267_v43 }
 0x13b   : > { %v514_v40 = vpack.c.bf16 %v508_v39, %v508_v39 }
 0x13d   : > { %v577_v41 = vsel %vm518_vm2, %v514_v40, 0  ;;  %v1629_v37 = vpop.permute.xlu2 %891 }
 0x13e   : > { %586 = vmatpush.bf16.msrb.mxu3 %v577_v41  ;;  %642 = vmatpush.bf16.msra.mxu2 %v1266_v44 }
 0x141   : > { %1202 = vmatmul.msk.bf16.vlgmr.msrb.gmra.mxu3 %vm443_vm1, %v1563_v42 }
 0x181   : > { %v731_v40 = vpop.permute.xlu2 %730 }
 0x1ac   : > { %v531_v50 = vpop.f32.mrf.mxu2 }
 0x1ad   : > { %v592_v52 = vmul.f32 %v1573_v51, %v531_v50 }
 0x1af   : > { %v602_v58 = vadd.f32 %v600_v48, %v592_v52 }
 0x1b1   : > { %v606_v63 = vmax.f32 %v602_v58, 0.0 }
 0x1b4   : > { %v533_v56 = vpop.f32.mrf.mxu2  ;;  %v550_v57 = vpop.f32.mrf.mxu3 }
 0x1b5   : > { %v593_v59 = vmul.f32 %v1576_v54, %v550_v57  ;;  %v754_v56 = vsel %vm443_vm1, %v744_v55, 0.0 }
 0x1b7   : > { %v603_v61 = vadd.f32 %v600_v48, %v593_v59 }
 0x1b9   : > { %v607_v0 = vmax.f32 %v603_v61, 0.0 }
 0x1bb   : > { %v610_v1 = vpack.c.bf16 %v607_v0, %v606_v63 }
 0x1bc   : > { %v552_v2 = vpop.f32.mrf.mxu3  ;;  %v569_v3 = vpop.f32.mrf.mxu2 }
 0x1bd   : > { %1215 = vmatmul.msk.bf16.vlgmr.msra.gmra.mxu2 %vm413_vm0, %v610_v1  ;;  %v594_v5 = vmul.f32 %v1580_v4, %v569_v3 }
 0x1bf   : > { %v604_v9 = vadd.f32 %v600_v48, %v594_v5 }
 0x1c1   : > { %v608_v12 = vmax.f32 %v604_v9, 0.0  ;;  %v1666_v9 = vpack.c.bf16 %v743_v47, %v743_v47 }
 0x1c4   : > { %v588_v7 = vpop.f32.mrf.mxu3  ;;  %v571_v8 = vpop.f32.mrf.mxu2 }
 0x1c5   : > { %v595_v10 = vmul.f32 %v1583_v6, %v588_v7 }
 0x1c7   : > { %v605_v11 = vadd.f32 %v600_v48, %v595_v10 }
 0x1c9   : > { %v609_v14 = vmax.f32 %v605_v11, 0.0 }
 0x1cb   : > { %v611_v15 = vpack.c.bf16 %v609_v14, %v608_v12  ;;  %v1671_v14 = vpack.c.bf16 %v744_v55, %v744_v55 }
 0x1cc   : > { %v590_v16 = vpop.f32.mrf.mxu3 }
 0x1cd   : > { %1216 = vmatmul.msk.bf16.gmra.mxu2 %vm413_vm0, %v611_v15  ;;  %v1271_v16 = vld [vmem:[%s1749_s7 + $0x18] sm:$0xff] }
 0x240   : > { %v644_v21 = vpop.f32.mrf.mxu2 }
 0x241   : > { %v654_v22 = vpack.c.bf16 %v644_v21, %v644_v21 }
 0x243   : > { %v659_v23 = vsel %vm518_vm2, %v654_v22, 0 }
 0x244   : > { %668 = vmatpush.bf16.msra.mxu3 %v659_v23 }
 0x247   : > { %1217 = vmatmul.msk.bf16.vlgmr.msra.gmra.mxu3 %vm443_vm1, %v1548_v30 }
 0x248   : > { %v646_v24 = vpop.f32.mrf.mxu2 }
 0x249   : > { %v655_v25 = vpack.c.bf16 %v646_v24, %v646_v24  ;;  %v1329_v24 = vpop.eup %1328 }
 0x24b   : > { %v675_v27 = vsel %vm518_vm2, %v655_v25, 0 }
 0x24c   : > { %684 = vmatpush.bf16.msrb.mxu0 %v675_v27 }
 0x24f   : > { %1218 = vmatmul.msk.bf16.vlgmr.msrb.gmra.mxu0 %vm443_vm1, %v1553_v34 }
 0x250   : > { %791 = vmatpush.bf16.msra.mxu0 %v1269_v26  ;;  %v649_v30 = vpop.f32.mrf.mxu2 }
 0x251   : > { %v656_v31 = vpack.c.bf16 %v649_v30, %v649_v30 }
 0x253   : > { %v691_v32 = vsel %vm518_vm2, %v656_v31, 0 }
 0x254   : > { %792 = vmatpush.bf16.msra.mxu0 %v1268_v28  ;;  %700 = vmatpush.bf16.msrb.mxu1 %v691_v32 }
 0x257   : > { %1219 = vmatmul.msk.bf16.vlgmr.msrb.gmra.mxu1 %vm443_vm1, %v1558_v38  ;;  %v742_v38 = vld [vmem:[%s1592_s26 + $0x8] sm:$0xff]  ;;  %s1070_s26 = scalar_lea.hbm %s1751_s9, %s1272_s17  ;;  %s1356_s17 = scalar_lea.hbm %s1751_s9, 64 }
 0x258   : > { %v651_v33 = vpop.f32.mrf.mxu2  ;;  %v748_v43 = vsel %vm443_vm1, %v742_v38, 0.0  ;;  %v1659_v3 = vpack.c.bf16 %v742_v38, %v742_v38  ;;  %s1073_s29 = sshll.u32 %s1070_s26, 4  ;;  %s1074_s29 = int_to_ptr.hbm [resolvable:$true] %s1073_s29 }
 0x259   : > { %v657_v35 = vpack.c.bf16 %v651_v33, %v651_v33  ;;  %749 = vadd.xlane.f32.xlu0 %v748_v43  ;;  %s1350_s27 = sshra.s32 %s1074_s29, 4  ;;  %s1351_s27 = int_to_ptr.hbm [resolvable:$true] %s1350_s27 }
 0x25a   : > { %s1352_s14 = scalar_lea.hbm %s1351_s27, 32  ;;  %p1357_p0 = scmp.lt.s32.totalorder %s1351_s27, %s1751_s9 }
 0x25b   : > { %v707_v34 = vsel %vm518_vm2, %v657_v35, 0  ;;  %p1353_p11 = scmp.ne.s32.totalorder %s1351_s27, %s1352_s14  ;;  %p1358_p1 = scmp.lt.s32.totalorder %s1356_s17, %s1352_s14 }
 0x25c   : > { %716 = vmatpush.bf16.msrb.mxu3 %v707_v34 }
 0x25d   : > { %p1354_p12 = pnand %p1353_p11, %p1492_p5  ;;  %p1359_p2 = por %p1358_p1, %p1357_p0 }
 0x25f   : > { %1220 = vmatmul.msk.bf16.vlgmr.msrb.gmra.mxu3 %vm443_vm1, %v1563_v42  ;;  %1230 = vmatmul.msk.bf16.vlgmr.msra.gmra.mxu0 %vm413_vm0, %v1529_v13  ;;  %p1355_p13 = pneg %p1354_p12 }
 0x261   : > { %752 = vadd.xlane.f32.xlu0 %v751_v49  ;;  %p1360_p3 = pnand %p1359_p2, %p1355_p13 }
 0x269   : > { %755 = vadd.xlane.f32.xlu0 %v754_v56 }
 0x26f   : > { %1231 = vmatmul.msk.bf16.gmra.mxu0 %vm413_vm0, %v1533_v18 }
 0x2ca   : > { %v670_v39 = vpop.f32.mrf.mxu3 }
 0x2cb   : > { %v722_v41 = vmul.f32 %v1573_v51, %v670_v39 }
 0x2cc   : > { %v686_v42 = vpop.f32.mrf.mxu0  ;;  %v750_v19 = vpop.xlane.xlu0 %749 }
 0x2cd   : > { %v733_v13 = vadd.f32 %v731_v40, %v722_v41  ;;  %v723_v18 = vmul.f32 %v1576_v54, %v686_v42  ;;  %v758_v23 = vadd.f32 1.0, %v750_v19 }
 0x2cf   : > { %v737_v44 = vmax.f32 %v733_v13, 0.0  ;;  %v734_v45 = vadd.f32 %v731_v40, %v723_v18  ;;  %1330 = vrcp.f32 %v758_v23 }
 0x2d1   : > { %v738_v46 = vmax.f32 %v734_v45, 0.0  ;;  %1033 = vst.msk [vmem:[%s1638_s25] sm:$0xff] %vm413_vm0, %v737_v44 }
 0x2d2   : > { %v672_v48 = vpop.f32.mrf.mxu3 }
 0x2d3   : > { %1034 = vst.msk [vmem:[%s1638_s25 + $0x8] sm:$0xff] %vm413_vm0, %v738_v46 }
 0x2d4   : > { %v688_v50 = vpop.f32.mrf.mxu0  ;;  %v702_v51 = vpop.f32.mrf.mxu1 }
 0x2d5   : > { %v724_v52 = vmul.f32 %v1580_v4, %v702_v51  ;;  %v753_v21 = vpop.xlane.xlu0 %752  ;;  %v1331_v28 = vpop.eup %1330  ;;  %v1254_v51 = vld [vmem:[%s1750_s8 + $0x8] sm:$0xff] }
 0x2d6   : > { %v759_v31 = vadd.f32 1.0, %v753_v21  ;;  %1022 = vperm.xlu0 %1318, %v1254_v51  }
 0x2d7   : > { %v735_v53 = vadd.f32 %v731_v40, %v724_v52 }
 0x2d9   : > { %v739_v54 = vmax.f32 %v735_v53, 0.0 }
 0x2db   : > { %1035 = vst.msk [vmem:[%s1638_s25 + $0x10] sm:$0xff] %vm413_vm0, %v739_v54 }
 0x2dc   : > { %v794_v57 = vpop.f32.mrf.mxu0  ;;  %v704_v58 = vpop.f32.mrf.mxu1 }
 0x2dd   : > { %v804_v59 = vpack.c.bf16 %v794_v57, %v794_v57  ;;  %v756_v27 = vpop.xlane.xlu0 %755 }
 0x2de   : > { %v760_v29 = vadd.f32 1.0, %v756_v27 }
 0x2df   : > { %v812_v61 = vsel %vm518_vm2, %v804_v59, 0 }
 0x2e0   : > { %821 = vmatpush.bf16.msra.mxu1 %v812_v61  ;;  %1332 = vrcp.f32 %v760_v29 }
 0x2e1   : > { %1334 = vrcp.f32 %v759_v31 }
 0x2e2   : > { %v718_v62 = vpop.f32.mrf.mxu3 }
 0x2e3   : > { %v725_v63 = vmul.f32 %v1583_v6, %v718_v62  ;;  %1232 = vmatmul.msk.bf16.vlgmr.msra.gmra.mxu1 %vm443_vm1, %v1653_v60 }
 0x2e4   : > { %v796_v0 = vpop.f32.mrf.mxu0 }
 0x2e5   : > { %v736_v1 = vadd.f32 %v731_v40, %v725_v63  ;;  %v805_v2 = vpack.c.bf16 %v796_v0, %v796_v0 }
 0x2e6   : > { %v1333_v39 = vpop.eup %1332 }
 0x2e7   : > { %v740_v4 = vmax.f32 %v736_v1, 0.0  ;;  %v831_v5 = vsel %vm518_vm2, %v805_v2, 0  ;;  %v1335_v43 = vpop.eup %1334 }
 0x2e8   : > { %840 = vmatpush.bf16.msrb.mxu2 %v831_v5 }
 0x2e9   : > { %1036 = vst.msk [vmem:[%s1638_s25 + $0x18] sm:$0xff] %vm413_vm0, %v740_v4 }
 0x2ea   : > { %v720_v7 = vpop.f32.mrf.mxu3 }
 0x2eb   : > { %1233 = vmatmul.msk.bf16.vlgmr.msrb.gmra.mxu2 %vm443_vm1, %v1659_v3 }
 0x2ec   : > { %v799_v8 = vpop.f32.mrf.mxu0  ;;  %933 = vmatpush.bf16.msra.mxu2 %v1271_v16 }
 0x2ed   : > { %v806_v6 = vpack.c.bf16 %v799_v8, %v799_v8 }
 0x2ef   : > { %v850_v10 = vsel %vm518_vm2, %v806_v6, 0 }
 0x2f0   : > { %859 = vmatpush.bf16.msra.mxu3 %v850_v10  ;;  %934 = vmatpush.bf16.msra.mxu2 %v1270_v17 }
 0x2f3   : > { %1234 = vmatmul.msk.bf16.vlgmr.msra.gmra.mxu3 %vm443_vm1, %v1666_v9 }
 0x2f4   : > { %v801_v11 = vpop.f32.mrf.mxu0 }
 0x2f5   : > { %v807_v12 = vpack.c.bf16 %v801_v11, %v801_v11 }
 0x2f7   : > { %v869_v15 = vsel %vm518_vm2, %v807_v12, 0 }
 0x2f8   : > { %878 = vmatpush.bf16.msrb.mxu1 %v869_v15 }
 0x2fb   : > { %1235 = vmatmul.msk.bf16.vlgmr.msrb.gmra.mxu1 %vm443_vm1, %v1671_v14 }
 0x348   : > { %v1023_v0 = vpop.permute.xlu0 %1022 }
 0x360   : > { %v823_v22 = vpop.f32.mrf.mxu1 }
 0x361   : > { %v884_v26 = vmul.f32 %v1329_v24, %v823_v22 }
 0x363   : > { %v894_v30 = vadd.f32 %v1629_v37, %v884_v26 }
 0x365   : > { %v898_v35 = vmax.f32 %v894_v30, 0.0 }
 0x368   : > { %v825_v25 = vpop.f32.mrf.mxu1 }
 0x36e   : > { %v842_v32 = vpop.f32.mrf.mxu2 }
 0x36f   : > { %v885_v33 = vmul.f32 %v1331_v28, %v842_v32 }
 0x371   : > { %v895_v34 = vadd.f32 %v1629_v37, %v885_v33 }
 0x373   : > { %v899_v36 = vmax.f32 %v895_v34, 0.0 }
 0x375   : > { %v902_v38 = vpack.c.bf16 %v899_v36, %v898_v35 }
 0x376   : > { %v844_v40 = vpop.f32.mrf.mxu2  ;;  %v861_v41 = vpop.f32.mrf.mxu3 }
 0x377   : > { %1248 = vmatmul.msk.bf16.vlgmr.msra.gmra.mxu2 %vm413_vm0, %v902_v38  ;;  %v886_v18 = vmul.f32 %v1335_v43, %v861_v41 }
 0x378   : > { %v880_v42 = vpop.f32.mrf.mxu1 }
 0x379   : > { %v887_v13 = vmul.f32 %v1333_v39, %v880_v42  ;;  %v896_v46 = vadd.f32 %v1629_v37, %v886_v18 }
 0x37b   : > { %v897_v44 = vadd.f32 %v1629_v37, %v887_v13  ;;  %v900_v49 = vmax.f32 %v896_v46, 0.0 }
 0x37d   : > { %v901_v48 = vmax.f32 %v897_v44, 0.0 }
 0x37e   : > { %v863_v45 = vpop.f32.mrf.mxu3 }
 0x37f   : > { %v903_v50 = vpack.c.bf16 %v901_v48, %v900_v49 }
 0x380   : > { %v882_v47 = vpop.f32.mrf.mxu1 }
 0x387   : > { %1249 = vmatmul.msk.bf16.gmra.mxu2 %vm413_vm0, %v903_v50 }
 0x3fa   : > { %v936_v52 = vpop.f32.mrf.mxu2 }
 0x3fb   : > { %v946_v53 = vpack.c.bf16 %v936_v52, %v936_v52 }
 0x3fd   : > { %v951_v54 = vsel %vm518_vm2, %v946_v53, 0 }
 0x3fe   : > { %960 = vmatpush.bf16.msrb.mxu3 %v951_v54 }
 0x401   : > { %1250 = vmatmul.msk.bf16.vlgmr.msrb.gmra.mxu3 %vm443_vm1, %v1653_v60 }
 0x402   : > { %v938_v37 = vpop.f32.mrf.mxu2 }
 0x403   : > { %v947_v55 = vpack.c.bf16 %v938_v37, %v938_v37 }
 0x405   : > { %v967_v56 = vsel %vm518_vm2, %v947_v55, 0 }
 0x406   : > { %976 = vmatpush.bf16.msrb.mxu0 %v967_v56 }
 0x409   : > { %1251 = vmatmul.msk.bf16.vlgmr.msrb.gmra.mxu0 %vm443_vm1, %v1659_v3 }
 0x40a   : > { %v941_v57 = vpop.f32.mrf.mxu2 }
 0x40b   : > { %v948_v58 = vpack.c.bf16 %v941_v57, %v941_v57 }
 0x40d   : > { %v983_v59 = vsel %vm518_vm2, %v948_v58, 0 }
 0x40e   : > { %992 = vmatpush.bf16.msra.mxu1 %v983_v59 }
 0x411   : > { %1252 = vmatmul.msk.bf16.vlgmr.msra.gmra.mxu1 %vm443_vm1, %v1666_v9 }
 0x412   : > { %v943_v61 = vpop.f32.mrf.mxu2 }
 0x413   : > { %v949_v62 = vpack.c.bf16 %v943_v61, %v943_v61 }
 0x415   : > { %v999_v60 = vsel %vm518_vm2, %v949_v62, 0 }
 0x416   : > { %1008 = vmatpush.bf16.msra.mxu3 %v999_v60 }
 0x419   : > { %1253 = vmatmul.msk.bf16.vlgmr.msra.gmra.mxu3 %vm443_vm1, %v1671_v14 }
 0x484   : > { %v962_v63 = vpop.f32.mrf.mxu3 }
 0x485   : > { %v1014_v1 = vmul.f32 %v1329_v24, %v962_v63 }
 0x486   : > { %v978_v2 = vpop.f32.mrf.mxu0 }
 0x487   : > { %v1025_v3 = vadd.f32 %v1023_v0, %v1014_v1  ;;  %v1015_v4 = vmul.f32 %v1331_v28, %v978_v2 }
 0x489   : > { %v1026_v5 = vadd.f32 %v1023_v0, %v1015_v4  ;;  %v1029_v7 = vmax.f32 %v1025_v3, 0.0 }
 0x48b   : > { %v1030_v8 = vmax.f32 %v1026_v5, 0.0  ;;  %1041 = vrot.lane.b32.xlu2 %v1029_v7, %s1401_s16 }
 0x48c   : > { %v964_v6 = vpop.f32.mrf.mxu3 }
 0x48d   : > { %1043 = vrot.lane.b32.xlu1 %v1030_v8, %s1401_s16 }
 0x48e   : > { %v994_v9 = vpop.f32.mrf.mxu1  ;;  %v980_v10 = vpop.f32.mrf.mxu0 }
 0x48f   : > { %v1016_v11 = vmul.f32 %v1335_v43, %v994_v9 }
 0x491   : > { %v1027_v12 = vadd.f32 %v1023_v0, %v1016_v11 }
 0x493   : > { %v1031_v14 = vmax.f32 %v1027_v12, 0.0 }
 0x495   : > { %1045 = vrot.lane.b32.xlu2 %v1031_v14, %s1401_s16 }
 0x496   : > { %v996_v15 = vpop.f32.mrf.mxu1 }
 0x49c   : > { %v1010_v16 = vpop.f32.mrf.mxu3 }
 0x49d   : > { %v1017_v17 = vmul.f32 %v1333_v39, %v1010_v16 }
 0x49f   : > { %v1028_v19 = vadd.f32 %v1023_v0, %v1017_v17 }
 0x4a1   : > { %v1032_v20 = vmax.f32 %v1028_v19, 0.0 }
 0x4a3   : > { %1047 = vrot.lane.b32.xlu2 %v1032_v20, %s1401_s16 }
 0x4a4   : > { %v1012_v21 = vpop.f32.mrf.mxu3 }
 0x4e5   : > { %v1042_v22 = vpop.permute.xlu2 %1041 }
 0x4e6   : > { %1054 = vst.msk [vmem:[%s1638_s25] sm:$0xff] %vm1053_vm3, %v1042_v22 }
 0x4ef   : > { %v1046_v23 = vpop.permute.xlu2 %1045 }
 0x4f0   : > { %1056 = vst.msk [vmem:[%s1638_s25 + $0x10] sm:$0xff] %vm1053_vm3, %v1046_v23 }
 0x4fd   : > { %v1048_v24 = vpop.permute.xlu2 %1047 }
 0x4fe   : > { %1057 = vst.msk [vmem:[%s1638_s25 + $0x18] sm:$0xff] %vm1053_vm3, %v1048_v24 }
 0x4ff   : > { %v1044_v25 = vpop.permute.xlu1 %1043 }
 0x500   : > { %1055 = vst.msk [vmem:[%s1638_s25 + $0x8] sm:$0xff] %vm1053_vm3, %v1044_v25 }
 0x501   : > { %1363 = shalt.err (!%p1360_p3)
}
 0x502   : > { %s1402_s22 = smov 128   ;;  %s1403_s25 = smov 8  }
 0x503   : > { %1273 = dma.vmem_to_hbm [thread:$0]  (%p1492_p5), %s1072_s28, 512, %s1074_s29, %s1059_s23, %s1402_s22, %s1402_s22, %s1403_s25  }
 0x504 PF: > { %p1279_p4 = scmp.ge.s32.totalorder %s1398_s12, 2  ;;  %s1088_s26 = sand.u32 1, %s1386_s30  }
 0x505   : > { %s1089_s13 = scalar_lea.sflag [#allocation3], %s1088_s26 }
 0x506   : > { %p1276_p7 = pnand %p1279_p4, %p1496_p6 }
 0x508   : > { %p1277_p8 = pneg %p1276_p7 }
 0x50a   : > { %1381 = dma.done.wait (%p1277_p8), %s1089_s13, 512  }
 0x50b   : > { %1383 = vsyncadd (%p1277_p8), %s1089_s13, 4294966784  ;;  %p19_p9 = scmp.ge.s32.totalorder %s1479_s15, 4   ;;  %s1754_s30 = smov %s1390_s10 }
 0x50c   : > { %s1755_s10 = smov %s1394_s11  ;;  %s1756_s11 = smov %s1490_s18 }
 0x50d   : > { %s1757_s12 = smov %s1479_s15  ;;  %21 = sbr.rel (!%p19_p9) target bundleno = 3 (0x3), region = 101 }
 0x512   :  { %1095 = vsyncpa [#allocation3], 1 }
 0x513   :  { %1097 = vsyncpa [#allocation3 + $0x1], 1 }

</bundles_post_ra>
